<compile_context>
chip_gen: v7x
topology: tpu7x:2x2x1
jax: 0.10.0
libtpu: 0.0.40
codegen_flags: <defaults>
</compile_context>

<pallas_src>
import functools

import jax
import jax.numpy as jnp
from jax.experimental import pallas as pl
from jax.experimental.pallas import tpu as pltpu


# -----------------------------------------------------------------------------
# Phase A: conv-as-matmul per M tile + per-tile per-channel partial stats.
#   p_ref     : (K, block_m)   im2col patch tile (K = 9*Cin on sublanes)
#   w_ref     : (CPAD, K)      conv weights, Cout zero-padded to CPAD (mult. 8)
#   y_ref     : (CPAD, block_m) conv output tile (pre-BN)
#   stats_ref : (CPAD, 2)      per-tile [sum(y), sum(y*y)] per channel
# -----------------------------------------------------------------------------
def _conv_stats_kernel(p_ref, w_ref, y_ref, stats_ref):
    y = jnp.dot(w_ref[...], p_ref[...], preferred_element_type=jnp.float32)
    y_ref[...] = y
    stats_ref[:, 0:1] = jnp.sum(y, axis=1, keepdims=True)
    stats_ref[:, 1:2] = jnp.sum(y * y, axis=1, keepdims=True)


# -----------------------------------------------------------------------------
# Phase B: folded BN affine + ReLU, elementwise per M tile (in-place on y).
#   y_ref     : (CPAD, block_m)
#   scale_ref : (CPAD, 1)   gamma * rsqrt(var + eps)
#   shift_ref : (CPAD, 1)   beta - mean * scale
#   o_ref     : (CPAD, block_m)
# -----------------------------------------------------------------------------
def _bn_relu_kernel(y_ref, scale_ref, shift_ref, o_ref):
    o_ref[...] = jnp.maximum(
        y_ref[...] * scale_ref[...] + shift_ref[...], 0.0
    ).astype(o_ref.dtype)


# -----------------------------------------------------------------------------
# Wrapper: CBA forward.  x is NCHW (PyTorch convention); output is NCHW.
# conv_b is accepted for interface parity but unused: bias is exactly cancelled
# by the train-mode BatchNorm mean subtraction.
# -----------------------------------------------------------------------------
@functools.partial(jax.jit, static_argnames=("eps", "block_m"))
def cba_forward(x_nchw, conv_w, conv_b, bn_gamma, bn_beta, eps=1e-5, block_m=128):
    del conv_b  # cancelled by train-mode BN (y - mean is bias-invariant)

    N, Cin, H, W = x_nchw.shape
    Cout = conv_w.shape[0]
    K = 9 * Cin
    CPAD = ((Cout + 7) // 8) * 8               # channels padded to sublane mult.
    M = N * H * W
    Mpad = ((M + block_m - 1) // block_m) * block_m
    n_tiles = Mpad // block_m

    # ---- layout prologue (fused by XLA) ------------------------------------
    # im2col in channel-major form (K, M): K ordered (cin, kh, kw),
    # M ordered (n, h, w).  block_m should be raised for large shapes.
    x_pad = jnp.pad(x_nchw, ((0, 0), (0, 0), (1, 1), (1, 1)))
    patches = jnp.stack(
        [x_pad[:, :, kh:kh + H, kw:kw + W] for kh in range(3) for kw in range(3)],
        axis=2,
    )                                           # (N, Cin, 9, H, W)
    patches = patches.transpose(1, 2, 0, 3, 4).reshape(K, M)
    if Mpad != M:
        patches = jnp.pad(patches, ((0, 0), (0, Mpad - M)))

    # PyTorch (Cout, Cin, 3, 3) -> (Cout, K) with K ordered (cin, kh, kw).
    w_cm = jnp.pad(conv_w.reshape(Cout, K), ((0, CPAD - Cout), (0, 0)))

    # ---- phase A: conv GEMM + per-tile partial stats ------------------------
    y, stats = pl.pallas_call(
        _conv_stats_kernel,
        out_shape=(
            jax.ShapeDtypeStruct((CPAD, Mpad), jnp.float32),
            jax.ShapeDtypeStruct((n_tiles, CPAD, 2), jnp.float32),
        ),
        grid_spec=pltpu.PrefetchScalarGridSpec(
            num_scalar_prefetch=0,
            grid=(n_tiles,),
            in_specs=[
                pl.BlockSpec((K, block_m), lambda i: (0, i)),
                pl.BlockSpec((CPAD, K), lambda i: (0, 0)),   # stays resident
            ],
            out_specs=[
                pl.BlockSpec((CPAD, block_m), lambda i: (0, i)),
                pl.BlockSpec((None, CPAD, 2), lambda i: (i, 0, 0)),
            ],
        ),
        compiler_params=pltpu.CompilerParams(dimension_semantics=("parallel",)),
        cost_estimate=pl.CostEstimate(
            flops=2 * CPAD * K * Mpad,
            transcendentals=0,
            bytes_accessed=4 * (K * Mpad + CPAD * K + CPAD * Mpad + n_tiles * CPAD * 2),
        ),
    )(patches, w_cm)

    # ---- fold BN into per-channel scale/shift (tiny, on (CPAD,) vectors) ----
    sum_y = jnp.sum(stats[:, :, 0], axis=0)              # (CPAD,)
    sum_sq = jnp.sum(stats[:, :, 1], axis=0)              # (CPAD,)
    inv_m = 1.0 / float(M)                                 # true M (padding adds 0)
    mean = sum_y * inv_m
    var = jnp.maximum(sum_sq * inv_m - mean * mean, 0.0)   # biased var, guarded
    gamma_p = jnp.pad(bn_gamma, (0, CPAD - Cout))
    beta_p = jnp.pad(bn_beta, (0, CPAD - Cout))
    scale = (gamma_p * jax.lax.rsqrt(var + eps)).reshape(CPAD, 1)
    shift = (beta_p - mean * gamma_p * jax.lax.rsqrt(var + eps)).reshape(CPAD, 1)

    # ---- phase B: folded scale/shift + ReLU, in-place on y -------------------
    out_cm = pl.pallas_call(
        _bn_relu_kernel,
        out_shape=jax.ShapeDtypeStruct((CPAD, Mpad), jnp.float32),
        grid_spec=pltpu.PrefetchScalarGridSpec(
            num_scalar_prefetch=0,
            grid=(n_tiles,),
            in_specs=[
                pl.BlockSpec((CPAD, block_m), lambda i: (0, i)),
                pl.BlockSpec((CPAD, 1), lambda i: (0, 0)),
                pl.BlockSpec((CPAD, 1), lambda i: (0, 0)),
            ],
            out_specs=pl.BlockSpec((CPAD, block_m), lambda i: (0, i)),
        ),
        compiler_params=pltpu.CompilerParams(dimension_semantics=("parallel",)),
        input_output_aliases={0: 0},
    )(y, scale, shift)

    # (CPAD, Mpad) -> (Cout, N, H, W) -> NCHW.
    out = out_cm[:Cout, :M].reshape(Cout, N, H, W)
    return jnp.transpose(out, (1, 0, 2, 3))


# -----------------------------------------------------------------------------
# Pure-JAX reference (same math, bias included) for the correctness check.
# -----------------------------------------------------------------------------
def cba_reference(x_nchw, conv_w, conv_b, bn_gamma, bn_beta, eps=1e-5):
    y = jax.lax.conv_general_dilated(
        x_nchw, conv_w, window_strides=(1, 1), padding=((1, 1), (1, 1)),
        dimension_numbers=("NCHW", "OIHW", "NCHW"),
    ) + conv_b[None, :, None, None]
    mean = jnp.mean(y, axis=(0, 2, 3), keepdims=True)
    var = jnp.mean((y - mean) ** 2, axis=(0, 2, 3), keepdims=True)
    y_hat = (y - mean) * jax.lax.rsqrt(var + eps)
    out = y_hat * bn_gamma[None, :, None, None] + bn_beta[None, :, None, None]
    return jnp.maximum(out, 0.0)


if __name__ == "__main__":
    # CBA(in_channels=4, out_channels=8, kernel_size=3)
    N, Cin, H, W, Cout = 2, 4, 16, 16, 8

    key = jax.random.PRNGKey(0)
    k_x, k_w, k_b = jax.random.split(key, 3)

    x = jax.random.normal(k_x, (N, Cin, H, W), dtype=jnp.float32)
    conv_w = jax.random.normal(k_w, (Cout, Cin, 3, 3), dtype=jnp.float32) * 0.1
    conv_b = jax.random.normal(k_b, (Cout,), dtype=jnp.float32) * 0.1
    # PyTorch BatchNorm2d default init: weight=1, bias=0.
    bn_gamma = jnp.ones((Cout,), dtype=jnp.float32)
    bn_beta = jnp.zeros((Cout,), dtype=jnp.float32)

    out = cba_forward(x, conv_w, conv_b, bn_gamma, bn_beta)
    out = jax.block_until_ready(out)

    ref = cba_reference(x, conv_w, conv_b, bn_gamma, bn_beta)
    assert out.shape == (N, Cout, H, W)
    assert jnp.allclose(out, ref, atol=1e-4, rtol=1e-4), "mismatch vs reference"

    print("KERNEL_OK")
</pallas_src>

<mosaic_0001>
module attributes {stable_mosaic.version = 11 : i64} {
  func.func @_conv_stats_kernel(%arg0: i32, %arg1: memref<36x128xf32, #tpu.memory_space<vmem>>, %arg2: memref<8x36xf32, #tpu.memory_space<vmem>>, %arg3: memref<8x128xf32, #tpu.memory_space<vmem>>, %arg4: memref<1x8x2xf32, #tpu.memory_space<vmem>>) attributes {dimension_semantics = [#tpu.dimension_semantics<parallel>], iteration_bounds = array<i64: 4>, scalar_prefetch = 0 : i64, scratch_operands = 0 : i64, tpu.core_type = #tpu.core_type<tc>, window_params = [{transform_indices = @transform_0, window_bounds = array<i64: 36, 128>}, {pipeline_mode = #tpu.pipeline_mode<synchronous>, transform_indices = @transform_1, window_bounds = array<i64: 8, 36>}, {transform_indices = @transform_2, window_bounds = array<i64: 8, 128>}, {transform_indices = @transform_3, window_bounds = array<i64: 1, 8, 2>}]} {
    %c0 = arith.constant 0 : index
    %c0_0 = arith.constant 0 : index
    %0 = vector.load %arg2[%c0, %c0_0] : memref<8x36xf32, #tpu.memory_space<vmem>>, vector<8x36xf32>
    %c0_1 = arith.constant 0 : index
    %c0_2 = arith.constant 0 : index
    %1 = vector.load %arg1[%c0_1, %c0_2] : memref<36x128xf32, #tpu.memory_space<vmem>>, vector<36x128xf32>
    %cst = arith.constant dense<0.000000e+00> : vector<8x128xf32>
    %2 = tpu.matmul %0, %1, %cst {dimension_numbers = #tpu.dot_dimension_numbers<[1], [0], [0], [1], [0, 0, 1, 1], [], []>} : vector<8x36xf32>, vector<36x128xf32>, vector<8x128xf32> -> vector<8x128xf32>
    %c0_3 = arith.constant 0 : index
    %c0_4 = arith.constant 0 : index
    %3 = vector.load %arg3[%c0_3, %c0_4] : memref<8x128xf32, #tpu.memory_space<vmem>>, vector<8x128xf32>
    tpu.vector_store %arg3[%c0_3, %c0_4], %2 {strides = array<i32>} : memref<8x128xf32, #tpu.memory_space<vmem>>, vector<8x128xf32>,
    %cst_5 = arith.constant dense<0.000000e+00> : vector<8xf32>
    %4 = vector.multi_reduction <add>, %2, %cst_5 [1] : vector<8x128xf32> to vector<8xf32>
    %5 = vector.shape_cast %4 : vector<8xf32> to vector<8x1xf32>
    %c0_6 = arith.constant 0 : index
    %c0_7 = arith.constant 0 : index
    %c0_8 = arith.constant 0 : index
    %6 = vector.load %arg4[%c0_6, %c0_7, %c0_8] : memref<1x8x2xf32, #tpu.memory_space<vmem>>, vector<1x8x1xf32>
    %7 = vector.shape_cast %6 : vector<1x8x1xf32> to vector<8x1xf32>
    %8 = vector.shape_cast %5 : vector<8x1xf32> to vector<1x8x1xf32>
    tpu.vector_store %arg4[%c0_6, %c0_7, %c0_8], %8 {strides = array<i32>} : memref<1x8x2xf32, #tpu.memory_space<vmem>>, vector<1x8x1xf32>,
    %9 = arith.mulf %2, %2 : vector<8x128xf32>
    %cst_9 = arith.constant dense<0.000000e+00> : vector<8xf32>
    %10 = vector.multi_reduction <add>, %9, %cst_9 [1] : vector<8x128xf32> to vector<8xf32>
    %11 = vector.shape_cast %10 : vector<8xf32> to vector<8x1xf32>
    %c0_10 = arith.constant 0 : index
    %c0_11 = arith.constant 0 : index
    %c1 = arith.constant 1 : index
    %12 = vector.load %arg4[%c0_10, %c0_11, %c1] : memref<1x8x2xf32, #tpu.memory_space<vmem>>, vector<1x8x1xf32>
    %13 = vector.shape_cast %12 : vector<1x8x1xf32> to vector<8x1xf32>
    %14 = vector.shape_cast %11 : vector<8x1xf32> to vector<1x8x1xf32>
    tpu.vector_store %arg4[%c0_10, %c0_11, %c1], %14 {strides = array<i32>} : memref<1x8x2xf32, #tpu.memory_space<vmem>>, vector<1x8x1xf32>,
    return
  }
  func.func @transform_0(%arg0: i32) -> (i32, i32) {
    %c0_i32 = arith.constant 0 : i32
    %c0_i32_0 = arith.constant 0 : i32
    return %c0_i32, %arg0 : i32, i32
  }
  func.func @transform_1(%arg0: i32) -> (i32, i32) {
    %c0_i32 = arith.constant 0 : i32
    %c0_i32_0 = arith.constant 0 : i32
    %c0_i32_1 = arith.constant 0 : i32
    return %c0_i32, %c0_i32_0 : i32, i32
  }
  func.func @transform_2(%arg0: i32) -> (i32, i32) {
    %c0_i32 = arith.constant 0 : i32
    %c0_i32_0 = arith.constant 0 : i32
    return %c0_i32, %arg0 : i32, i32
  }
  func.func @transform_3(%arg0: i32) -> (i32, i32, i32) {
    %c0_i32 = arith.constant 0 : i32
    %c0_i32_0 = arith.constant 0 : i32
    %c0_i32_1 = arith.constant 0 : i32
    return %arg0, %c0_i32, %c0_i32_0 : i32, i32, i32
  }
}

module attributes {stable_mosaic.version = 11 : i64} {
  func.func @_bn_relu_kernel(%arg0: i32, %arg1: memref<8x128xf32, #tpu.memory_space<vmem>>, %arg2: memref<8x1xf32, #tpu.memory_space<vmem>>, %arg3: memref<8x1xf32, #tpu.memory_space<vmem>>, %arg4: memref<8x128xf32, #tpu.memory_space<vmem>>) attributes {dimension_semantics = [#tpu.dimension_semantics<parallel>], iteration_bounds = array<i64: 4>, scalar_prefetch = 0 : i64, scratch_operands = 0 : i64, tpu.core_type = #tpu.core_type<tc>, window_params = [{transform_indices = @transform_0, window_bounds = array<i64: 8, 128>}, {pipeline_mode = #tpu.pipeline_mode<synchronous>, transform_indices = @transform_1, window_bounds = array<i64: 8, 1>}, {pipeline_mode = #tpu.pipeline_mode<synchronous>, transform_indices = @transform_2, window_bounds = array<i64: 8, 1>}, {transform_indices = @transform_3, window_bounds = array<i64: 8, 128>}]} {
    %c0 = arith.constant 0 : index
    %c0_0 = arith.constant 0 : index
    %0 = vector.load %arg1[%c0, %c0_0] : memref<8x128xf32, #tpu.memory_space<vmem>>, vector<8x128xf32>
    %c0_1 = arith.constant 0 : index
    %c0_2 = arith.constant 0 : index
    %1 = vector.load %arg2[%c0_1, %c0_2] : memref<8x1xf32, #tpu.memory_space<vmem>>, vector<8x1xf32>
    %2 = vector.broadcast %1 : vector<8x1xf32> to vector<8x128xf32>
    %3 = arith.mulf %0, %2 : vector<8x128xf32>
    %c0_3 = arith.constant 0 : index
    %c0_4 = arith.constant 0 : index
    %4 = vector.load %arg3[%c0_3, %c0_4] : memref<8x1xf32, #tpu.memory_space<vmem>>, vector<8x1xf32>
    %5 = vector.broadcast %4 : vector<8x1xf32> to vector<8x128xf32>
    %6 = arith.addf %3, %5 : vector<8x128xf32>
    %cst = arith.constant 0.000000e+00 : f32
    %7 = vector.broadcast %cst : f32 to vector<8x128xf32>
    %8 = arith.maximumf %6, %7 : vector<8x128xf32>
    %c0_5 = arith.constant 0 : index
    %c0_6 = arith.constant 0 : index
    %9 = vector.load %arg4[%c0_5, %c0_6] : memref<8x128xf32, #tpu.memory_space<vmem>>, vector<8x128xf32>
    tpu.vector_store %arg4[%c0_5, %c0_6], %8 {strides = array<i32>} : memref<8x128xf32, #tpu.memory_space<vmem>>, vector<8x128xf32>,
    return
  }
  func.func @transform_0(%arg0: i32) -> (i32, i32) {
    %c0_i32 = arith.constant 0 : i32
    %c0_i32_0 = arith.constant 0 : i32
    return %c0_i32, %arg0 : i32, i32
  }
  func.func @transform_1(%arg0: i32) -> (i32, i32) {
    %c0_i32 = arith.constant 0 : i32
    %c0_i32_0 = arith.constant 0 : i32
    %c0_i32_1 = arith.constant 0 : i32
    return %c0_i32, %c0_i32_0 : i32, i32
  }
  func.func @transform_2(%arg0: i32) -> (i32, i32) {
    %c0_i32 = arith.constant 0 : i32
    %c0_i32_0 = arith.constant 0 : i32
    %c0_i32_1 = arith.constant 0 : i32
    return %c0_i32, %c0_i32_0 : i32, i32
  }
  func.func @transform_3(%arg0: i32) -> (i32, i32) {
    %c0_i32 = arith.constant 0 : i32
    %c0_i32_0 = arith.constant 0 : i32
    return %c0_i32, %arg0 : i32, i32
  }
}

</mosaic_0001>

<bundles_post_ra>
// kernel: cba_forward.2
= control target key start
LH: loop header
LB: loop body
LE: loop exit
PB: predicated region body
PF: predicated region fallthrough
CT: control target
= control target key end

     0   :  { %s527_s12 = smov 0   ;;  %s529_s13 = smov 0   ;;  %s587_s0 = inlined_call_operand.vmem [shape: f32[36,512], index: 0, kind: input, shape index: {}]   ;;  %s588_s1 = inlined_call_operand.vmem [shape: f32[8,36], index: 1, kind: input, shape index: {}]   ;;  %s589_s2 = inlined_call_operand.vmem [shape: f32[8,512], index: 2, kind: output, shape index: {0}]   ;;  %s590_s3 = inlined_call_operand.vmem [shape: f32[4,8,2], index: 3, kind: output, shape index: {1}]  }
   0x1   :  { %s531_s14 = smov 0  }
   0x2 LB: > { %s414_s15 = sadd.s32 4294967295, %s502_s14   ;;  %s544_s16 = sadd.s32 1, %s502_s14   ;;  %s502_s14 = sphi %s531_s14, %s593_s14   ;;  %s498_s13 = sphi %s529_s13, %s592_s13   ;;  %s494_s12 = sphi %s527_s12, %s591_s12  }
   0x3   : > { %s18_s17 = ssub.s32 %s502_s14, %s544_s16  ;;  %s21_s18 = sadd.s32 1, %s498_s13 }
   0x4   : > { %p19_p0 = scmp.eq.s32.totalorder %s18_s17, 0  ;;  %p28_p1 = scmp.ne.s32.totalorder %s498_s13, %s494_s12 }
   0x5   : > { %p29_p2 = scmp.eq.s32.totalorder %s502_s14, 0  ;;  %p417_p4 = scmp.ge.s32.totalorder %s502_s14, 4 }
   0x6   : > { %s553_s19 = scalar_select %p19_p0, %s498_s13, %s21_s18  }
   0x7   : > { %p30_p3 = por %p29_p2, %p28_p1  ;;  %130 = sbr.rel (%p417_p4) target bundleno = 23 (0x17), region = 20 }
   0xe   : > { %133 = sbr.rel (!%p30_p3) target bundleno = 23 (0x17), region = 24  ;;  %s135_s20 = sand.u32 (%p30_p3), 1, %s498_s13  }
   0xf   : > { %s418_s21 = sshll.u32 (%p30_p3), %s502_s14, 3  ;;  %s451_s22 = smul.u32 (%p30_p3), 40, %s135_s20 }
  0x10   : > { %s139_s25 = scalar_lea.vmem (%p30_p3), %s587_s0, %s418_s21 }
  0x11   : > { %v175_v0 = vld [vmem:[%s139_s25] sm:$0xff] (%p30_p3)  ;;  %s137_s26 = scalar_lea.vmem (%p30_p3), [#allocation2], %s451_s22 }
  0x12   : > { %v177_v1 = vld [vmem:[%s139_s25 + $0x20] sm:$0xff] (%p30_p3)  ;;  %176 = vst [vmem:[%s137_s26] sm:$0xff] (%p30_p3), %v175_v0 }
  0x13   : > { %v179_v2 = vld [vmem:[%s139_s25 + $0x40] sm:$0xff] (%p30_p3)  ;;  %178 = vst [vmem:[%s137_s26 + $0x8] sm:$0xff] (%p30_p3), %v177_v1 }
  0x14   : > { %v181_v3 = vld [vmem:[%s139_s25 + $0x60] sm:$0xff] (%p30_p3)  ;;  %180 = vst [vmem:[%s137_s26 + $0x10] sm:$0xff] (%p30_p3), %v179_v2 }
  0x15   : > { %v183_v4 = vld [vmem:[%s139_s25 + $0x80] sm:$0xff]  ;;  %182 = vst [vmem:[%s137_s26 + $0x18] sm:$0xff] %v181_v3 }
  0x16   : > { %184 = vst [vmem:[%s137_s26 + $0x20] sm:$0xff] %v183_v4 }
  0x17 PF: > { %p419_p5 = scmp.ge.s32.totalorder %s502_s14, 1  ;;  %p189_p6 = scmp.lt.s32.totalorder %s502_s14, 5 }
  0x19   : > { %p190_p7 = pnand %p419_p5, %p189_p6 }
  0x1a   : > { %s196_s27 = sand.u32 (!%p190_p7), 1, %s494_s12   ;;  %v504_v5 = vmov (!%p190_p7), 0.0|0.0   ;;  %vm505_vm0 = vmmov (!%p190_p7), 0   ;;  %v506_v6 = vmov (!%p190_p7), 0.0   ;;  %vm240_vm1 = vcmask (!%p190_p7), 1043456   ;;  %v230_v14 = vld [vmem:[%s588_s1] sm:$0xff] (!%p190_p7) }
  0x1b   : > { %193 = sbr.rel (%p190_p7) target bundleno = 402 (0x192), region = 62  ;;  %445 = vmatprep.subr.bf16.mxu0 (!%p190_p7), %v504_v5  ;;  %442 = vmatprep.mubr.msk.f32.mxu0 (!%p190_p7), %vm505_vm0, %v506_v6  ;;  %vm236_vm2 = vcmask (!%p190_p7), 293888   ;;  %p222_p8 = scmp.lt.s32.totalorder (!%p190_p7), %s414_s15, 3  ;;  %vm317_vm3 = vcmask (!%p190_p7), 7168   ;;  %vm322_vm4 = vcmask (!%p190_p7), 15368  }
  0x1c   : > { %s452_s28 = smul.u32 (!%p190_p7), 40, %s196_s27 }
  0x1e   : > { %s198_s29 = scalar_lea.vmem (!%p190_p7), [#allocation2], %s452_s28 }
  0x1f   : > { %v231_v7 = vld [vmem:[%s198_s29] sm:$0xff] (!%p190_p7)  ;;  %v232_v8 = vld [vmem:[%s198_s29 + $0x8] sm:$0xff] (!%p190_p7)  ;;  %v233_v9 = vld [vmem:[%s198_s29 + $0x10] sm:$0xff] (!%p190_p7) }
  0x20   : > { %v446_v10 = vpack.c.bf16 (!%p190_p7), %v232_v8, %v231_v7  ;;  %v234_v11 = vld [vmem:[%s198_s29 + $0x18] sm:$0xff] (!%p190_p7)  ;;  %v235_v13 = vld [vmem:[%s198_s29 + $0x20] sm:$0xf] (!%p190_p7) }
  0x21   : > { %v449_v12 = vpack.c.bf16 (!%p190_p7), %v234_v11, %v233_v9 }
  0x22   : > { %447 = vmatpush3.bf16.msra.mxu0 %v446_v10  ;;  %s595_s15 = smov (!%p222_p8, %s414_s15), 3 }
  0x23   : > { %448 = vmatprep.subr.bf16.mxu0 %v504_v5  ;;  %s420_s5 = sshll.u32 %s595_s15, 3 }
  0x24   : > { %s225_s8 = scalar_lea.vmem %s589_s2, %s420_s5  ;;  %s229_s11 = scalar_lea.vmem %s590_s3, %s420_s5 }
  0x26   : > { %450 = vmatpush3.bf16.msra.mxu0 %v449_v12 }
  0x27   : > { %440 = vmatprep.subr.mxu0 %v506_v6 }
  0x2a   : > { %441 = vmatpush3.msk.msra.mxu0 %vm240_vm1, %v235_v13 }
  0x2b   : > { %443 = vmatmul.mubr.msk.f32.vlgmr.msra.gmra.mrb[0].mxu0 %vm236_vm2, %v230_v14 }
  0xfe   : > { %v310_v15 = vpop.f32.mrb[0].mxu0 }
  0xff   : > { %314 = vst [vmem:[%s225_s8] sm:$0xff] %v310_v15  ;;  %315 = vadd.xlane.f32.xlu0 %v310_v15  ;;  %v444_v16 = vpop.f32.mrb[1].mxu0  ;;  %v319_v17 = vmul.f32 %v310_v15, %v310_v15 }
 0x103   : > { %320 = vadd.xlane.f32.xlu0 %v319_v17 }
 0x18c   : > { %v316_v18 = vpop.xlane.xlu0 %315 }
 0x18d   : > { %318 = vst.msk [vmem:[%s229_s11] sm:$0xff] %vm317_vm3, %v316_v18 }
 0x190   : > { %v321_v19 = vpop.xlane.xlu0 %320 }
 0x191   : > { %323 = vst.msk [vmem:[%s229_s11] sm:$0xff] %vm322_vm4, %v321_v19 }
 0x192 PF: > { %p11_p9 = scmp.ge.s32.totalorder %s544_s16, 6   ;;  %s591_s12 = smov %s498_s13 }
 0x193   : > { %s592_s13 = smov %s553_s19  ;;  %s593_s14 = smov %s544_s16 }
 0x194   :  { %13 = sbr.rel (!%p11_p9) target bundleno = 2 (0x2), region = 113 }

// kernel: cba_forward.3
= control target key start
LH: loop header
LB: loop body
LE: loop exit
PB: predicated region body
PF: predicated region fallthrough
CT: control target
= control target key end

     0   :  { %s284_s12 = smov 0   ;;  %s301_s0 = inlined_call_operand.vmem [shape: f32[8,512], index: 0, kind: input, shape index: {}, may-alias: {0,3}]   ;;  %s302_s1 = inlined_call_operand.vmem [shape: f32[8,1], index: 1, kind: input, shape index: {}]   ;;  %s303_s2 = inlined_call_operand.vmem [shape: f32[8,1], index: 2, kind: input, shape index: {}]   ;;  %s304_s3 = inlined_call_operand.vmem [shape: f32[8,512], index: 3, kind: output, shape index: {}, may-alias: {0,3}]  }
   0x1 LB: > { %s236_s13 = sadd.s32 4294967295, %s261_s12   ;;  %p240_p0 = scmp.ge.s32.totalorder %s261_s12, 1  ;;  %s261_s12 = sphi %s284_s12, %s13_s12  }
   0x2   : > { %p136_p1 = scmp.lt.s32.totalorder %s261_s12, 5 }
   0x4   : > { %p137_p2 = pnand %p240_p0, %p136_p1 }
   0x5   : > { %v167_v0 = vld [vmem:[%s302_s1] sm:$0xff] (!%p137_p2)  ;;  %v263_v1 = vmov (!%p137_p2), 0   ;;  %p158_p3 = scmp.lt.s32.totalorder (!%p137_p2), %s236_s13, 3 }
   0x6   : > { %140 = sbr.rel (%p137_p2) target bundleno = 144 (0x90), region = 32  ;;  %254 = vset.pattern.permute.xlu0 (!%p137_p2), %v263_v1  ;;  %v174_v2 = vld [vmem:[%s303_s2] sm:$0xff] (!%p137_p2) }
   0x7   : > { %170 = vperm.xlu0 (!%p137_p2), %254, %v167_v0  }
   0xb   : > { %177 = vperm.xlu0 (!%p137_p2), %254, %v174_v2  }
   0xd   : > { %s306_s13 = smov (!%p158_p3, %s236_s13), 3 }
   0xe   : > { %s241_s18 = sshll.u32 %s306_s13, 3 }
   0xf   : > { %s161_s21 = scalar_lea.vmem %s301_s0, %s241_s18  ;;  %s165_s24 = scalar_lea.vmem %s304_s3, %s241_s18 }
  0x10   : > { %v166_v4 = vld [vmem:[%s161_s21] sm:$0xff] }
  0x86   : > { %v171_v3 = vpop.permute.xlu0 %170 }
  0x87   : > { %v173_v5 = vmul.f32 %v171_v3, %v166_v4 }
  0x8a   : > { %v178_v6 = vpop.permute.xlu0 %177 }
  0x8b   : > { %v180_v7 = vadd.f32 %v178_v6, %v173_v5 }
  0x8d   : > { %v181_v8 = vmax.f32 %v180_v7, 0.0 }
  0x8f   : > { %182 = vst [vmem:[%s165_s24] sm:$0xff] %v181_v8 }
  0x90 PF: > { %s13_s12 = sadd.s32 1, %s261_s12  }
  0x91   : > { %p10_p4 = scmp.ge.s32.totalorder %s13_s12, 6  }
  0x93   :  { %12 = sbr.rel (!%p10_p4) target bundleno = 1 (0x1), region = 62 }

</bundles_post_ra>
